<compile_context>
chip_gen: v7x
topology: tpu7x:2x2x1
jax: 0.10.0
libtpu: 0.0.40
codegen_flags: <defaults>
</compile_context>

<pallas_src>
import jax
import jax.numpy as jnp
from jax import lax
from jax.experimental import pallas as pl
from jax.experimental.pallas import tpu as pltpu


def _round_up(x, m):
    return ((x + m - 1) // m) * m


def _mlp_value_kernel(x_ref, w1_ref, w2_ref, side_ref, b3_ref, o_ref):
    """One batch tile of fc1 -> relu -> fc2 -> relu -> out.

    Shapes (batch on lanes):
      x_ref   : (tb, S)  f32, native batch-major layout straight from HBM
      w1_ref  : (H, S)   compute dtype (PyTorch (out, in) layout, MXU LHS)
      w2_ref  : (H, H)   compute dtype
      side_ref: (H, 3)   f32: [:, 0]=b1, [:, 1]=b2, [:, 2]=w3 column
      b3_ref  : (1,)     f32 scalar in SMEM
      o_ref   : (1, tb)  f32 (lane-dense output row)
    """
    # In-kernel cast (free VPU pack) instead of a separate HBM convert pass.
    x = x_ref[...].astype(w1_ref.dtype)                                   # (tb, S)
    # Contract on the last dims (trans_b matmul): no wrapper transpose of x,
    # result lands as (H, tb) with batch on lanes.
    h1 = lax.dot_general(w1_ref[...], x, (((1,), (1,)), ((), ())),
                         preferred_element_type=jnp.float32)              # (H, tb)
    h1 = jnp.maximum(h1 + side_ref[:, 0:1], 0.0)
    h2 = jnp.dot(w2_ref[...], h1.astype(w2_ref.dtype),
                 preferred_element_type=jnp.float32)                      # (H, tb)
    h2 = jnp.maximum(h2 + side_ref[:, 1:2], 0.0)
    # Final (H -> 1) layer: VPU multiply + XLU sublane reduce (no N=1 MXU
    # push) -> (1, tb) lane-dense output row directly.
    v = jnp.sum(h2 * side_ref[:, 2:3], axis=0, keepdims=True)             # (1, tb)
    o_ref[...] = (v + b3_ref[0]).astype(o_ref.dtype)


def safety_value_forward(state, params, *, batch_tile=None,
                         compute_dtype=jnp.float32):
    """state: (B, state_dim) f32; params in PyTorch layout. Returns (B, 1) f32."""
    w1, b1, w2, b2, w3, b3 = params
    B, S = state.shape
    H = w1.shape[0]

    # Large per-step tiles: per-grid-step overhead dwarfs the compute of a
    # 128-row tile, and 256-wide MXUs (v6e/v7x) want N >= 256.  Cap at 2048
    # (working set stays well under v5e's 16 MiB scoped-VMEM default, so no
    # vmem_limit_bytes override needed).  For big batches keep >= 2 parallel
    # grid steps so v7x's two TensorCores both get work.
    if batch_tile is None:
        max_tb = 2048
        b_lane = _round_up(B, 128)               # full-width (unmasked) stores
        if b_lane <= 2 * 128:
            batch_tile = b_lane                  # tiny batch: single step
        else:
            half = _round_up((b_lane + 1) // 2, 128)
            batch_tile = min(max_tb, half)
    grid_b = -(-B // batch_tile)                 # cdiv
    B_pad = grid_b * batch_tile
    if grid_b > 1 and batch_tile % 128 != 0:
        raise ValueError("multi-tile runs require batch_tile % 128 == 0")

    # Native (B, S) layout; only zero-pad the batch when not a tile multiple.
    x = state if B_pad == B else jnp.pad(state, ((0, B_pad - B), (0, 0)))

    w1c = w1.astype(compute_dtype)                       # (H, S)
    w2c = w2.astype(compute_dtype)                       # (H, H)
    side = jnp.stack(
        [b1.astype(jnp.float32),
         b2.astype(jnp.float32),
         w3.reshape(H).astype(jnp.float32)], axis=1)     # (H, 3) = [b1|b2|w3]
    b3c = b3.reshape(1).astype(jnp.float32)              # scalar via SMEM

    itemsize = jnp.dtype(compute_dtype).itemsize
    cost = pl.CostEstimate(
        flops=2 * B_pad * (S * H + H * H + H),
        transcendentals=0,
        bytes_accessed=(B_pad * S * 4 + B_pad * 4
                        + (H * S + H * H) * itemsize + H * 3 * 4 + 4))

    out = pl.pallas_call(
        _mlp_value_kernel,
        out_shape=jax.ShapeDtypeStruct((1, B_pad), jnp.float32),
        grid_spec=pltpu.PrefetchScalarGridSpec(
            num_scalar_prefetch=0,
            grid=(grid_b,),
            in_specs=[
                pl.BlockSpec((batch_tile, S), lambda i: (i, 0)),    # x tile
                # Grid-invariant weights / packed side input: constant
                # index_map -> fetched once, no per-step re-DMA.
                # TODO(synk): single-buffer (pl.Buffered(1)) or K-tile W2 if
                # H ever grows large enough that 2*H^2 pressures VMEM.
                pl.BlockSpec((H, S), lambda i: (0, 0)),             # W1
                pl.BlockSpec((H, H), lambda i: (0, 0)),             # W2
                pl.BlockSpec((H, 3), lambda i: (0, 0)),             # [b1|b2|w3]
                pl.BlockSpec(memory_space=pltpu.MemorySpace.SMEM),  # b3 scalar
            ],
            out_specs=pl.BlockSpec((1, batch_tile), lambda i: (0, i)),
        ),
        compiler_params=pltpu.CompilerParams(
            dimension_semantics=("parallel",)),
        cost_estimate=cost,
    )(x, w1c, w2c, side, b3c)

    return out[0, :B].reshape(B, 1)


def init_params(key, state_dim, hidden_dim=128):
    """PyTorch-layout params: W is (out_features, in_features), b is (out,)."""
    ks = jax.random.split(key, 6)

    def lin(kw, kb, fan_in, fan_out):
        bound = 1.0 / jnp.sqrt(jnp.float32(fan_in))
        w = jax.random.uniform(kw, (fan_out, fan_in), jnp.float32,
                               -bound, bound)
        b = jax.random.uniform(kb, (fan_out,), jnp.float32, -bound, bound)
        return w, b

    w1, b1 = lin(ks[0], ks[1], state_dim, hidden_dim)
    w2, b2 = lin(ks[2], ks[3], hidden_dim, hidden_dim)
    w3, b3 = lin(ks[4], ks[5], hidden_dim, 1)
    return (w1, b1, w2, b2, w3, b3)


def reference_forward(state, params):
    w1, b1, w2, b2, w3, b3 = params
    x = jnp.maximum(state @ w1.T + b1, 0.0)
    x = jnp.maximum(x @ w2.T + b2, 0.0)
    return x @ w3.T + b3


if __name__ == "__main__":
    key = jax.random.PRNGKey(0)
    k_params, k_small, k_big = jax.random.split(key, 3)

    state_dim, hidden_dim = 32, 128
    params = init_params(k_params, state_dim, hidden_dim)

    # Tiny batch: single grid step, batch zero-padded to one full 128-lane
    # tile (unmasked stores).
    state = jax.random.normal(k_small, (8, state_dim), jnp.float32)
    value = jax.block_until_ready(safety_value_forward(state, params))
    ref = reference_forward(state, params)
    assert value.shape == (8, 1)
    assert jnp.allclose(value, ref, atol=1e-5, rtol=1e-5)

    # Non-tile-multiple batch: exercises zero-padding + 2 parallel grid steps
    # (sharded across v7x's two TensorCores; no-op on v5e/v6e).
    state2 = jax.random.normal(k_big, (300, state_dim), jnp.float32)
    value2 = jax.block_until_ready(safety_value_forward(state2, params))
    ref2 = reference_forward(state2, params)
    assert value2.shape == (300, 1)
    assert jnp.allclose(value2, ref2, atol=1e-5, rtol=1e-5)

    # bf16 MXU operands (valid on v5e/v6e/v7x); x cast in-kernel,
    # accumulation stays f32, loose tolerance.
    value_bf16 = jax.block_until_ready(
        safety_value_forward(state2, params, compute_dtype=jnp.bfloat16))
    assert jnp.allclose(value_bf16, ref2, atol=1e-1, rtol=1e-1)

    print("KERNEL_OK")
</pallas_src>

<mosaic_0001>
module attributes {stable_mosaic.version = 11 : i64} {
  func.func @_mlp_value_kernel(%arg0: i32, %arg1: memref<128x32xf32, #tpu.memory_space<vmem>>, %arg2: memref<128x32xf32, #tpu.memory_space<vmem>>, %arg3: memref<128x128xf32, #tpu.memory_space<vmem>>, %arg4: memref<128x3xf32, #tpu.memory_space<vmem>>, %arg5: memref<1xf32, #tpu.memory_space<smem>>, %arg6: memref<1x128xf32, #tpu.memory_space<vmem>>) attributes {dimension_semantics = [#tpu.dimension_semantics<parallel>], iteration_bounds = array<i64: 1>, scalar_prefetch = 0 : i64, scratch_operands = 0 : i64, tpu.core_type = #tpu.core_type<tc>, window_params = [{transform_indices = @transform_0, window_bounds = array<i64: 128, 32>}, {pipeline_mode = #tpu.pipeline_mode<synchronous>, transform_indices = @transform_1, window_bounds = array<i64: 128, 32>}, {pipeline_mode = #tpu.pipeline_mode<synchronous>, transform_indices = @transform_2, window_bounds = array<i64: 128, 128>}, {pipeline_mode = #tpu.pipeline_mode<synchronous>, transform_indices = @transform_3, window_bounds = array<i64: 128, 3>}, {transform_indices = @transform_4, window_bounds = array<i64: 1>}, {transform_indices = @transform_5, window_bounds = array<i64: 1, 128>}]} {
    %c0 = arith.constant 0 : index
    %c0_0 = arith.constant 0 : index
    %0 = vector.load %arg1[%c0, %c0_0] : memref<128x32xf32, #tpu.memory_space<vmem>>, vector<128x32xf32>
    %c0_1 = arith.constant 0 : index
    %c0_2 = arith.constant 0 : index
    %1 = vector.load %arg2[%c0_1, %c0_2] : memref<128x32xf32, #tpu.memory_space<vmem>>, vector<128x32xf32>
    %cst = arith.constant dense<0.000000e+00> : vector<128x128xf32>
    %2 = tpu.matmul %1, %0, %cst {dimension_numbers = #tpu.dot_dimension_numbers<[1], [1], [0], [0], [0, 0, 1, 0], [], []>} : vector<128x32xf32>, vector<128x32xf32>, vector<128x128xf32> -> vector<128x128xf32>
    %c0_3 = arith.constant 0 : index
    %c0_4 = arith.constant 0 : index
    %3 = vector.load %arg4[%c0_3, %c0_4] : memref<128x3xf32, #tpu.memory_space<vmem>>, vector<128x1xf32>
    %4 = vector.broadcast %3 : vector<128x1xf32> to vector<128x128xf32>
    %5 = arith.addf %2, %4 : vector<128x128xf32>
    %cst_5 = arith.constant 0.000000e+00 : f32
    %6 = vector.broadcast %cst_5 : f32 to vector<128x128xf32>
    %7 = arith.maximumf %5, %6 : vector<128x128xf32>
    %c0_6 = arith.constant 0 : index
    %c0_7 = arith.constant 0 : index
    %8 = vector.load %arg3[%c0_6, %c0_7] : memref<128x128xf32, #tpu.memory_space<vmem>>, vector<128x128xf32>
    %cst_8 = arith.constant dense<0.000000e+00> : vector<128x128xf32>
    %9 = tpu.matmul %8, %7, %cst_8 {dimension_numbers = #tpu.dot_dimension_numbers<[1], [0], [0], [1], [0, 0, 1, 1], [], []>} : vector<128x128xf32>, vector<128x128xf32>, vector<128x128xf32> -> vector<128x128xf32>
    %c0_9 = arith.constant 0 : index
    %c1 = arith.constant 1 : index
    %10 = vector.load %arg4[%c0_9, %c1] : memref<128x3xf32, #tpu.memory_space<vmem>>, vector<128x1xf32>
    %11 = vector.broadcast %10 : vector<128x1xf32> to vector<128x128xf32>
    %12 = arith.addf %9, %11 : vector<128x128xf32>
    %cst_10 = arith.constant 0.000000e+00 : f32
    %13 = vector.broadcast %cst_10 : f32 to vector<128x128xf32>
    %14 = arith.maximumf %12, %13 : vector<128x128xf32>
    %c0_11 = arith.constant 0 : index
    %c2 = arith.constant 2 : index
    %15 = vector.load %arg4[%c0_11, %c2] : memref<128x3xf32, #tpu.memory_space<vmem>>, vector<128x1xf32>
    %16 = vector.broadcast %15 : vector<128x1xf32> to vector<128x128xf32>
    %17 = arith.mulf %14, %16 : vector<128x128xf32>
    %cst_12 = arith.constant dense<0.000000e+00> : vector<128xf32>
    %18 = vector.multi_reduction <add>, %17, %cst_12 [0] : vector<128x128xf32> to vector<128xf32>
    %19 = vector.shape_cast %18 : vector<128xf32> to vector<1x128xf32>
    %c0_13 = arith.constant 0 : index
    %20 = memref.load %arg5[%c0_13] : memref<1xf32, #tpu.memory_space<smem>>
    %21 = vector.broadcast %20 : f32 to vector<1x128xf32>
    %22 = arith.addf %19, %21 : vector<1x128xf32>
    %c0_14 = arith.constant 0 : index
    %c0_15 = arith.constant 0 : index
    %23 = vector.load %arg6[%c0_14, %c0_15] : memref<1x128xf32, #tpu.memory_space<vmem>>, vector<1x128xf32>
    tpu.vector_store %arg6[%c0_14, %c0_15], %22 {strides = array<i32>} : memref<1x128xf32, #tpu.memory_space<vmem>>, vector<1x128xf32>,
    return
  }
  func.func @transform_0(%arg0: i32) -> (i32, i32) {
    %c0_i32 = arith.constant 0 : i32
    %c0_i32_0 = arith.constant 0 : i32
    return %arg0, %c0_i32 : i32, i32
  }
  func.func @transform_1(%arg0: i32) -> (i32, i32) {
    %c0_i32 = arith.constant 0 : i32
    %c0_i32_0 = arith.constant 0 : i32
    %c0_i32_1 = arith.constant 0 : i32
    return %c0_i32, %c0_i32_0 : i32, i32
  }
  func.func @transform_2(%arg0: i32) -> (i32, i32) {
    %c0_i32 = arith.constant 0 : i32
    %c0_i32_0 = arith.constant 0 : i32
    %c0_i32_1 = arith.constant 0 : i32
    return %c0_i32, %c0_i32_0 : i32, i32
  }
  func.func @transform_3(%arg0: i32) -> (i32, i32) {
    %c0_i32 = arith.constant 0 : i32
    %c0_i32_0 = arith.constant 0 : i32
    %c0_i32_1 = arith.constant 0 : i32
    return %c0_i32, %c0_i32_0 : i32, i32
  }
  func.func @transform_4(%arg0: i32) -> i32 {
    %c0_i32 = arith.constant 0 : i32
    %c0_i32_0 = arith.constant 0 : i32
    return %c0_i32 : i32
  }
  func.func @transform_5(%arg0: i32) -> (i32, i32) {
    %c0_i32 = arith.constant 0 : i32
    %c0_i32_0 = arith.constant 0 : i32
    return %c0_i32, %arg0 : i32, i32
  }
}

</mosaic_0001>

<bundles_post_ra>
// kernel: tpu_custom_call.1
= control target key start
LH: loop header
LB: loop body
LE: loop exit
PB: predicated region body
PF: predicated region fallthrough
CT: control target
= control target key end

     0   :  { %vm150_vm0 = vcmask 261120   ;;  %v1101_v6 = vmov 0   ;;  %s1500_s0 = inlined_call_operand.vmem [shape: f32[128,32], index: 0, kind: input, shape index: {}]   ;;  %s1501_s1 = inlined_call_operand.vmem [shape: f32[128,32], index: 1, kind: input, shape index: {}]   ;;  %s1502_s2 = inlined_call_operand.vmem [shape: f32[128,128], index: 2, kind: input, shape index: {}]   ;;  %s1503_s3 = inlined_call_operand.vmem [shape: f32[128,3], index: 3, kind: input, shape index: {}]   ;;  %s1504_s4 = inlined_call_operand.<no memory space> [shape: f32[1], index: 4, kind: input, shape index: {}]   ;;  %s1505_s5 = inlined_call_operand.hbm [shape: f32[1,128], index: 5, kind: output, shape index: {}]  }
   0x1   :  { %v22_v0 = vld [vmem:[%s1500_s0] sm:$0xff]  ;;  %v23_v1 = vld [vmem:[%s1500_s0 + $0x8] sm:$0xff]  ;;  %v24_v2 = vld [vmem:[%s1500_s0 + $0x10] sm:$0xff]  ;;  %1060 = vset.pattern.permute.xlu0 %v1101_v6  ;;  %1061 = vset.pattern.permute.xlu1 %v1101_v6 }
   0x2   :  { %v976_v3 = vpack.c.bf16 %v23_v1, %v22_v0  ;;  %vm1146_vm1 = vmpackc.low %vm150_vm0, %vm150_vm0  ;;  %v25_v5 = vld [vmem:[%s1500_s0 + $0x18] sm:$0xff]  ;;  %v38_v8 = vld [vmem:[%s1501_s1] sm:$0xff] }
   0x3   :  { %v982_v7 = vpack.c.bf16 %v25_v5, %v24_v2  ;;  %v26_v9 = vld [vmem:[%s1500_s0 + $0x20] sm:$0xff]  ;;  %v27_v10 = vld [vmem:[%s1500_s0 + $0x28] sm:$0xff]  ;;  %896 = vmatprep.mubr.msk.f32.mxu0 %vm150_vm0, %v38_v8  ;;  %v1177_v13 = vld [vmem:[%s1503_s3 + $0x10] sm:$0xff] }
   0x4   :  { %978 = vmatprep.subr.msk.bf16.mxu0 %vm1146_vm1, %v976_v3  ;;  %v988_v11 = vpack.c.bf16 %v27_v10, %v26_v9  ;;  %v1172_v12 = vld [vmem:[%s1503_s3] sm:$0xff]  ;;  %82 = vperm.xlu1 %1061, %v1177_v13   ;;  %v1188_v14 = vld [vmem:[%s1503_s3 + $0x8] sm:$0xff]  ;;  %v28_v15 = vld [vmem:[%s1500_s0 + $0x30] sm:$0xff] }
   0x5   :  { %981 = vmatpush3.bf16.xpose.msk.msra.mxu0 %vm1146_vm1, %v976_v3  ;;  %72 = vperm.xlu0 %1060, %v1172_v12   ;;  %v29_v16 = vld [vmem:[%s1500_s0 + $0x38] sm:$0xff] }
   0x6   :  { %984 = vmatprep.subr.msk.bf16.mxu0 %vm1146_vm1, %v982_v7  ;;  %v1199_v17 = vld [vmem:[%s1503_s3 + $0x18] sm:$0xff] }
   0x9   :  { %77 = vperm.xlu0 %1060, %v1188_v14  }
   0xd   :  { %987 = vmatpush3.bf16.xpose.msk.msra.mxu0 %vm1146_vm1, %v982_v7 }
   0xe   :  { %990 = vmatprep.subr.msk.bf16.mxu0 %vm1146_vm1, %v988_v11 }
   0xf   :  { %11 = vsyncpa [#allocation4], 0  ;;  %v994_v18 = vpack.c.bf16 %v29_v16, %v28_v15  ;;  %87 = vperm.xlu1 %1061, %v1199_v17   ;;  %v1206_v19 = vld [vmem:[%s1503_s3 + $0x20] sm:$0xff]  ;;  %v1211_v20 = vld [vmem:[%s1503_s3 + $0x28] sm:$0xff]  ;;  %v1102_v59 = vmov 1   ;;  %v1103_v60 = vmov 2  }
  0x10   :  { %92 = vperm.xlu0 %1060, %v1206_v19   ;;  %v1222_v21 = vld [vmem:[%s1503_s3 + $0x30] sm:$0xff]  ;;  %v30_v22 = vld [vmem:[%s1500_s0 + $0x40] sm:$0xff]  ;;  %v31_v23 = vld [vmem:[%s1500_s0 + $0x48] sm:$0xff]  ;;  %s1104_s14 = smov [#allocation3]  }
  0x11   :  { %v1233_v24 = vld [vmem:[%s1503_s3 + $0x38] sm:$0xff]  ;;  %v1000_v25 = vpack.c.bf16 %v31_v23, %v30_v22  ;;  %v1240_v26 = vld [vmem:[%s1503_s3 + $0x40] sm:$0xff]  ;;  %v1245_v27 = vld [vmem:[%s1503_s3 + $0x48] sm:$0xff]  ;;  %s760_s15 = sshll.u32 %s1104_s14, 4  ;;  %s761_s15 = int_to_ptr.vmem [resolvable:$true] %s760_s15 }
  0x12   :  { %v1256_v28 = vld [vmem:[%s1503_s3 + $0x50] sm:$0xff]  ;;  %v33_v30 = vld [vmem:[%s1500_s0 + $0x58] sm:$0xff]  ;;  %v1274_v33 = vld [vmem:[%s1503_s3 + $0x60] sm:$0xff]  ;;  %s1077_s16 = scalar_lea.vmem %s761_s15, 16  ;;  %s1081_s17 = scalar_lea.vmem %s761_s15, 32 }
  0x13   :  { %97 = vperm.xlu1 %1061, %v1211_v20   ;;  %v32_v29 = vld [vmem:[%s1500_s0 + $0x50] sm:$0xff]  ;;  %v1267_v31 = vld [vmem:[%s1503_s3 + $0x58] sm:$0xff]  ;;  %v1279_v34 = vld [vmem:[%s1503_s3 + $0x68] sm:$0xff]  ;;  %p1078_p0 = scmp.ne.s32.totalorder %s761_s15, %s1077_s16  ;;  %p1082_p1 = scmp.lt.s32.totalorder %s761_s15, %s761_s15 }
  0x14   :  { %102 = vperm.xlu0 %1060, %v1222_v21   ;;  %v1006_v32 = vpack.c.bf16 %v33_v30, %v32_v29  ;;  %v1290_v35 = vld [vmem:[%s1503_s3 + $0x70] sm:$0xff]  ;;  %v34_v36 = vld [vmem:[%s1500_s0 + $0x60] sm:$0xff]  ;;  %v35_v37 = vld [vmem:[%s1500_s0 + $0x68] sm:$0xff]  ;;  %p1083_p2 = scmp.lt.s32.totalorder %s1081_s17, %s1077_s16 }
  0x15   :  { %993 = vmatpush3.bf16.xpose.msk.msra.mxu0 %vm1146_vm1, %v988_v11  ;;  %v1301_v38 = vld [vmem:[%s1503_s3 + $0x78] sm:$0xff]  ;;  %v1012_v39 = vpack.c.bf16 %v35_v37, %v34_v36  ;;  %v36_v40 = vld [vmem:[%s1500_s0 + $0x70] sm:$0xff]  ;;  %v39_v43 = vld [vmem:[%s1501_s1 + $0x8] sm:$0xff] }
  0x16   :  { %996 = vmatprep.subr.msk.bf16.mxu0 %vm1146_vm1, %v994_v18  ;;  %v37_v41 = vld [vmem:[%s1500_s0 + $0x78] sm:$0xff]  ;;  %v40_v44 = vld [vmem:[%s1501_s1 + $0x10] sm:$0xff]  ;;  %v42_v46 = vld [vmem:[%s1501_s1 + $0x20] sm:$0xff]  ;;  %p1084_p3 = por %p1083_p2, %p1082_p1 }
  0x17   :  { %107 = vperm.xlu1 %1061, %v1233_v24   ;;  %v1018_v42 = vpack.c.bf16 %v37_v41, %v36_v40  ;;  %v41_v45 = vld [vmem:[%s1501_s1 + $0x18] sm:$0xff]  ;;  %v43_v47 = vld [vmem:[%s1501_s1 + $0x28] sm:$0xff]  ;;  %v44_v48 = vld [vmem:[%s1501_s1 + $0x30] sm:$0xff] }
  0x18   :  { %112 = vperm.xlu0 %1060, %v1240_v26   ;;  %v45_v49 = vld [vmem:[%s1501_s1 + $0x38] sm:$0xff]  ;;  %v46_v50 = vld [vmem:[%s1501_s1 + $0x40] sm:$0xff]  ;;  %v47_v51 = vld [vmem:[%s1501_s1 + $0x48] sm:$0xff]  ;;  %p1085_p4 = pnand %p1084_p3, %p1078_p0 }
  0x19   :  { %v48_v52 = vld [vmem:[%s1501_s1 + $0x50] sm:$0xff]  ;;  %v49_v53 = vld [vmem:[%s1501_s1 + $0x58] sm:$0xff]  ;;  %v50_v54 = vld [vmem:[%s1501_s1 + $0x60] sm:$0xff] }
  0x1a   :  { %v51_v55 = vld [vmem:[%s1501_s1 + $0x68] sm:$0xff]  ;;  %v52_v56 = vld [vmem:[%s1501_s1 + $0x70] sm:$0xff]  ;;  %v53_v57 = vld [vmem:[%s1501_s1 + $0x78] sm:$0xff] }
  0x1b   :  { %117 = vperm.xlu1 %1061, %v1245_v27   ;;  %v408_v58 = vld [vmem:[%s1502_s2] sm:$0xff] }
  0x1c   :  { %122 = vperm.xlu0 %1060, %v1256_v28   ;;  %952 = vmatprep.mubr.f32.mxu1 %v408_v58 }
  0x1d   :  { %999 = vmatpush3.bf16.xpose.msk.msra.mxu0 %vm1146_vm1, %v994_v18 }
  0x1e   :  { %1002 = vmatprep.subr.msk.bf16.mxu0 %vm1146_vm1, %v1000_v25 }
  0x1f   :  { %127 = vperm.xlu1 %1061, %v1267_v31  }
  0x20   :  { %132 = vperm.xlu0 %1060, %v1274_v33  }
  0x23   :  { %137 = vperm.xlu1 %1061, %v1279_v34  }
  0x24   :  { %142 = vperm.xlu0 %1060, %v1290_v35  }
  0x25   :  { %1005 = vmatpush3.bf16.xpose.msk.msra.mxu0 %vm1146_vm1, %v1000_v25 }
  0x26   :  { %1008 = vmatprep.subr.msk.bf16.mxu0 %vm1146_vm1, %v1006_v32 }
  0x27   :  { %147 = vperm.xlu1 %1061, %v1301_v38  }
  0x28   :  { %1064 = vset.pattern.permute.xlu0 %v1103_v60 }
  0x29   :  { %654 = vperm.xlu0 %1064, %v1188_v14  }
  0x2b   :  { %1062 = vset.pattern.permute.xlu1 %v1102_v59 }
  0x2c   :  { %429 = vperm.xlu1 %1062, %v1188_v14  }
  0x2d   :  { %1011 = vmatpush3.bf16.xpose.msk.msra.mxu0 %vm1146_vm1, %v1006_v32  ;;  %666 = vperm.xlu0 %1064, %v1206_v19  }
  0x2e   :  { %1014 = vmatprep.subr.msk.bf16.mxu0 %vm1146_vm1, %v1012_v39 }
  0x30   :  { %433 = vperm.xlu1 %1062, %v1177_v13  }
  0x31   :  { %678 = vperm.xlu0 %1064, %v1233_v24  }
  0x34   :  { %1063 = vset.pattern.permute.xlu1 %v1103_v60 }
  0x35   :  { %1017 = vmatpush3.bf16.xpose.msk.msra.mxu0 %vm1146_vm1, %v1012_v39  ;;  %650 = vperm.xlu1 %1063, %v1172_v12  }
  0x36   :  { %1020 = vmatprep.subr.msk.bf16.mxu0 %vm1146_vm1, %v1018_v42  ;;  %690 = vperm.xlu0 %1064, %v1256_v28  }
  0x39   :  { %1065 = vset.pattern.permute.xlu1 %v1102_v59 }
  0x3a   :  { %441 = vperm.xlu1 %1065, %v1206_v19   ;;  %1072 = vset.pattern.permute.xlu0 %v1102_v59 }
  0x3b   :  { %425 = vperm.xlu0 %1072, %v1172_v12  }
  0x3d   :  { %1023 = vmatpush3.bf16.xpose.msk.msra.mxu0 %vm1146_vm1, %v1018_v42 }
  0x3e   :  { %1066 = vset.pattern.permute.xlu1 %v1103_v60 }
  0x3f   :  { %658 = vperm.xlu1 %1066, %v1177_v13   ;;  %437 = vperm.xlu0 %1072, %v1199_v17  }
  0x43   :  { %662 = vperm.xlu1 %1066, %v1199_v17   ;;  %445 = vperm.xlu0 %1072, %v1211_v20  }
  0x44   :  { %897 = vmatmul.mubr.msk.f32.vlgmr.msra.gmra.mrb[0].mxu0 %vm150_vm0, %v39_v43 }
  0x45   :  { %899 = vmatprep.mubr.msk.f32.mxu0 %vm150_vm0, %v40_v44 }
  0x47   :  { %1067 = vset.pattern.permute.xlu1 %v1102_v59  ;;  %457 = vperm.xlu0 %1072, %v1240_v26  }
  0x48   :  { %900 = vmatmul.mubr.msk.f32.gmra.mrb[2].mxu0 %vm150_vm0, %v41_v45  ;;  %449 = vperm.xlu1 %1067, %v1222_v21  }
  0x49   :  { %902 = vmatprep.mubr.msk.f32.mxu0 %vm150_vm0, %v42_v46 }
  0x4b   :  { %469 = vperm.xlu0 %1072, %v1267_v31  }
  0x4c   :  { %903 = vmatmul.mubr.msk.f32.gmra.mrb[4].mxu0 %vm150_vm0, %v43_v47  ;;  %453 = vperm.xlu1 %1067, %v1233_v24  }
  0x4d   :  { %905 = vmatprep.mubr.msk.f32.mxu0 %vm150_vm0, %v44_v48 }
  0x4f   :  { %481 = vperm.xlu0 %1072, %v1290_v35  }
  0x50   :  { %906 = vmatmul.mubr.msk.f32.gmra.mrb[6].mxu0 %vm150_vm0, %v45_v49  ;;  %1068 = vset.pattern.permute.xlu1 %v1103_v60 }
  0x51   :  { %908 = vmatprep.mubr.msk.f32.mxu0 %vm150_vm0, %v46_v50  ;;  %670 = vperm.xlu1 %1068, %v1211_v20  }
  0x53   :  { %1075 = vset.pattern.permute.xlu0 %v1103_v60 }
  0x54   :  { %909 = vmatmul.mubr.msk.f32.gmra.mrb[8].mxu0 %vm150_vm0, %v47_v51  ;;  %702 = vperm.xlu0 %1075, %v1279_v34  }
  0x55   :  { %911 = vmatprep.mubr.msk.f32.mxu0 %vm150_vm0, %v48_v52  ;;  %674 = vperm.xlu1 %1068, %v1222_v21  }
  0x58   :  { %912 = vmatmul.mubr.msk.f32.gmra.mrb[10].mxu0 %vm150_vm0, %v49_v53 }
  0x59   :  { %914 = vmatprep.mubr.msk.f32.mxu0 %vm150_vm0, %v50_v54  ;;  %1069 = vset.pattern.permute.xlu1 %v1102_v59 }
  0x5a   :  { %461 = vperm.xlu1 %1069, %v1245_v27  }
  0x5c   :  { %915 = vmatmul.mubr.msk.f32.gmra.mrb[12].mxu0 %vm150_vm0, %v51_v55 }
  0x5d   :  { %917 = vmatprep.mubr.msk.f32.mxu0 %vm150_vm0, %v52_v56 }
  0x5e   :  { %465 = vperm.xlu1 %1069, %v1256_v28  }
  0x60   :  { %918 = vmatmul.mubr.msk.f32.gmra.mrb[14].mxu0 %vm150_vm0, %v53_v57 }
  0x62   :  { %1070 = vset.pattern.permute.xlu1 %v1103_v60 }
  0x63   :  { %682 = vperm.xlu1 %1070, %v1240_v26  }
  0x67   :  { %686 = vperm.xlu1 %1070, %v1245_v27  }
  0x6b   :  { %1071 = vset.pattern.permute.xlu1 %v1102_v59 }
  0x6c   :  { %473 = vperm.xlu1 %1071, %v1274_v33  }
  0x70   :  { %477 = vperm.xlu1 %1071, %v1279_v34  }
  0x74   :  { %1073 = vset.pattern.permute.xlu1 %v1103_v60 }
  0x75   :  { %694 = vperm.xlu1 %1073, %v1267_v31  }
  0x79   :  { %698 = vperm.xlu1 %1073, %v1274_v33  }
  0x7d   :  { %1074 = vset.pattern.permute.xlu1 %v1102_v59 }
  0x7e   :  { %485 = vperm.xlu1 %1074, %v1301_v38  }
  0x82   :  { %1076 = vset.pattern.permute.xlu1 %v1103_v60 }
  0x83   :  { %v83_v61 = vpop.permute.xlu1 %82  ;;  %706 = vperm.xlu1 %1076, %v1290_v35  }
  0x84   :  { %v73_v62 = vpop.permute.xlu0 %72 }
  0x87   :  { %710 = vperm.xlu1 %1076, %v1301_v38   ;;  %v409_v38 = vld [vmem:[%s1502_s2 + $0x8] sm:$0xff] }
  0x88   :  { %v78_v0 = vpop.permute.xlu0 %77 }
  0x8e   :  { %v88_v63 = vpop.permute.xlu1 %87 }
  0x8f   :  { %v93_v2 = vpop.permute.xlu0 %92 }
  0x92   :  { %v98_v1 = vpop.permute.xlu1 %97 }
  0x93   :  { %v103_v11 = vpop.permute.xlu0 %102 }
  0x96   :  { %v108_v8 = vpop.permute.xlu1 %107 }
  0x97   :  { %v113_v24 = vpop.permute.xlu0 %112 }
  0x9a   :  { %v118_v21 = vpop.permute.xlu1 %117 }
  0x9b   :  { %v123_v39 = vpop.permute.xlu0 %122 }
  0x9e   :  { %v128_v34 = vpop.permute.xlu1 %127 }
  0x9f   :  { %v133_v51 = vpop.permute.xlu0 %132 }
  0xa2   :  { %v138_v48 = vpop.permute.xlu1 %137 }
  0xa3   :  { %v143_v35 = vpop.permute.xlu0 %142 }
  0xa6   :  { %v148_v60 = vpop.permute.xlu1 %147 }
 0x117   :  { %v898_v3 = vpop.f32.mrb[0].mxu0 }
 0x118   :  { %v319_v4 = vadd.f32 %v898_v3, %v78_v0  ;;  %v313_v5 = vpop.f32.mrb[1].mxu0 }
 0x119   :  { %v314_v6 = vadd.f32 %v313_v5, %v73_v62 }
 0x11a   :  { %v393_v7 = vmax.f32 %v319_v4, 0.0 }
 0x11b   :  { %v392_v9 = vmax.f32 %v314_v6, 0.0  ;;  %v901_v10 = vpop.f32.mrb[2].mxu0  ;;  %v410_v6 = vld [vmem:[%s1502_s2 + $0x10] sm:$0xff] }
 0x11c   :  { %v329_v12 = vadd.f32 %v901_v10, %v88_v63  ;;  %v323_v13 = vpop.f32.mrb[3].mxu0  ;;  %v414_v10 = vld [vmem:[%s1502_s2 + $0x30] sm:$0xff] }
 0x11d   :  { %v324_v14 = vadd.f32 %v323_v13, %v83_v61  ;;  %v1024_v15 = vpack.c.bf16 %v393_v7, %v392_v9  ;;  %v411_v7 = vld [vmem:[%s1502_s2 + $0x18] sm:$0xff]  ;;  %v413_v9 = vld [vmem:[%s1502_s2 + $0x28] sm:$0xff] }
 0x11e   :  { %v395_v16 = vmax.f32 %v329_v12, 0.0  ;;  %v416_v12 = vld [vmem:[%s1502_s2 + $0x40] sm:$0xff]  ;;  %v417_v13 = vld [vmem:[%s1502_s2 + $0x48] sm:$0xff] }
 0x11f   :  { %v394_v17 = vmax.f32 %v324_v14, 0.0  ;;  %v904_v18 = vpop.f32.mrb[4].mxu0  ;;  %1025 = vmatprep.subr.bf16.mxu1 %v1024_v15  ;;  %v418_v14 = vld [vmem:[%s1502_s2 + $0x50] sm:$0xff] }
 0x120   :  { %v339_v19 = vadd.f32 %v904_v18, %v98_v1  ;;  %v333_v20 = vpop.f32.mrb[5].mxu0  ;;  %1027 = vmatpush3.bf16.msra.mxu1 %v1024_v15  ;;  %v419_v15 = vld [vmem:[%s1502_s2 + $0x58] sm:$0xff]  ;;  %v422_v18 = vld [vmem:[%s1502_s2 + $0x70] sm:$0xff] }
 0x121   :  { %v1028_v22 = vpack.c.bf16 %v395_v16, %v394_v17  ;;  %v334_v23 = vadd.f32 %v333_v20, %v93_v2  ;;  %v420_v16 = vld [vmem:[%s1502_s2 + $0x60] sm:$0xff]  ;;  %v421_v17 = vld [vmem:[%s1502_s2 + $0x68] sm:$0xff]  ;;  %v430_v20 = vpop.permute.xlu1 %429 }
 0x122   :  { %v397_v25 = vmax.f32 %v339_v19, 0.0  ;;  %v423_v19 = vld [vmem:[%s1502_s2 + $0x78] sm:$0xff] }
 0x123   :  { %v396_v26 = vmax.f32 %v334_v23, 0.0  ;;  %v907_v27 = vpop.f32.mrb[6].mxu0  ;;  %1029 = vmatprep.subr.bf16.mxu1 %v1028_v22 }
 0x124   :  { %v349_v28 = vadd.f32 %v907_v27, %v108_v8  ;;  %v343_v29 = vpop.f32.mrb[7].mxu0  ;;  %1031 = vmatpush3.bf16.msra.mxu1 %v1028_v22  ;;  %v412_v8 = vld [vmem:[%s1502_s2 + $0x20] sm:$0xff] }
 0x125   :  { %v1032_v30 = vpack.c.bf16 %v397_v25, %v396_v26  ;;  %v344_v31 = vadd.f32 %v343_v29, %v103_v11  ;;  %v415_v11 = vld [vmem:[%s1502_s2 + $0x38] sm:$0xff] }
 0x126   :  { %v399_v32 = vmax.f32 %v349_v28, 0.0 }
 0x127   :  { %v398_v36 = vmax.f32 %v344_v31, 0.0  ;;  %v910_v37 = vpop.f32.mrb[8].mxu0  ;;  %1033 = vmatprep.subr.bf16.mxu1 %v1032_v30 }
 0x128   :  { %v359_v40 = vadd.f32 %v910_v37, %v118_v21  ;;  %v353_v33 = vpop.f32.mrb[9].mxu0  ;;  %1035 = vmatpush3.bf16.msra.mxu1 %v1032_v30  ;;  %v434_v21 = vpop.permute.xlu1 %433 }
 0x129   :  { %v1036_v41 = vpack.c.bf16 %v399_v32, %v398_v36  ;;  %v354_v42 = vadd.f32 %v353_v33, %v113_v24  ;;  %v655_v30 = vpop.permute.xlu0 %654 }
 0x12a   :  { %v401_v43 = vmax.f32 %v359_v40, 0.0 }
 0x12b   :  { %v400_v44 = vmax.f32 %v354_v42, 0.0  ;;  %v913_v45 = vpop.f32.mrb[10].mxu0  ;;  %1037 = vmatprep.subr.bf16.mxu1 %v1036_v41 }
 0x12c   :  { %v369_v46 = vadd.f32 %v913_v45, %v128_v34  ;;  %v363_v47 = vpop.f32.mrb[11].mxu0  ;;  %1039 = vmatpush3.bf16.msra.mxu1 %v1036_v41  ;;  %v651_v22 = vpop.permute.xlu1 %650 }
 0x12d   :  { %v1040_v49 = vpack.c.bf16 %v401_v43, %v400_v44  ;;  %v364_v50 = vadd.f32 %v363_v47, %v123_v39  ;;  %v667_v32 = vpop.permute.xlu0 %666 }
 0x12e   :  { %v403_v52 = vmax.f32 %v369_v46, 0.0 }
 0x12f   :  { %v402_v53 = vmax.f32 %v364_v50, 0.0  ;;  %v916_v54 = vpop.f32.mrb[12].mxu0  ;;  %1041 = vmatprep.subr.bf16.mxu1 %v1040_v49 }
 0x130   :  { %v379_v55 = vadd.f32 %v916_v54, %v138_v48  ;;  %v373_v56 = vpop.f32.mrb[13].mxu0  ;;  %1043 = vmatpush3.bf16.msra.mxu1 %v1040_v49  ;;  %v442_v23 = vpop.permute.xlu1 %441 }
 0x131   :  { %v1044_v57 = vpack.c.bf16 %v403_v52, %v402_v53  ;;  %v374_v58 = vadd.f32 %v373_v56, %v133_v51  ;;  %v679_v36 = vpop.permute.xlu0 %678 }
 0x132   :  { %v405_v59 = vmax.f32 %v379_v55, 0.0 }
 0x133   :  { %v404_v61 = vmax.f32 %v374_v58, 0.0  ;;  %v919_v62 = vpop.f32.mrb[14].mxu0  ;;  %1045 = vmatprep.subr.bf16.mxu1 %v1044_v57 }
 0x134   :  { %v389_v63 = vadd.f32 %v919_v62, %v148_v60  ;;  %v383_v0 = vpop.f32.mrb[15].mxu0  ;;  %1047 = vmatpush3.bf16.msra.mxu1 %v1044_v57  ;;  %v659_v24 = vpop.permute.xlu1 %658 }
 0x135   :  { %v1048_v1 = vpack.c.bf16 %v405_v59, %v404_v61  ;;  %v384_v2 = vadd.f32 %v383_v0, %v143_v35  ;;  %v1478_v39 = vpop.permute.xlu0 %690 }
 0x136   :  { %v407_v3 = vmax.f32 %v389_v63, 0.0 }
 0x137   :  { %v406_v4 = vmax.f32 %v384_v2, 0.0  ;;  %1049 = vmatprep.subr.bf16.mxu1 %v1048_v1 }
 0x138   :  { %1051 = vmatpush3.bf16.msra.mxu1 %v1048_v1  ;;  %v663_v25 = vpop.permute.xlu1 %662 }
 0x139   :  { %v1052_v5 = vpack.c.bf16 %v407_v3, %v406_v4  ;;  %v426_v33 = vpop.permute.xlu0 %425 }
 0x13b   :  { %1053 = vmatprep.subr.bf16.mxu1 %v1052_v5 }
 0x13c   :  { %1055 = vmatpush3.bf16.msra.mxu1 %v1052_v5  ;;  %v450_v26 = vpop.permute.xlu1 %449 }
 0x13d   :  { %v438_v43 = vpop.permute.xlu0 %437 }
 0x13f   :  { %953 = vmatmul.mubr.f32.vlgmr.msra.gmra.mrb[0].mxu1 %v409_v38 }
 0x140   :  { %955 = vmatprep.mubr.f32.mxu1 %v410_v6  ;;  %v454_v27 = vpop.permute.xlu1 %453 }
 0x141   :  { %v446_v56 = vpop.permute.xlu0 %445 }
 0x143   :  { %956 = vmatmul.mubr.f32.gmra.mrb[2].mxu1 %v411_v7 }
 0x144   :  { %958 = vmatprep.mubr.f32.mxu1 %v412_v8  ;;  %v671_v28 = vpop.permute.xlu1 %670 }
 0x145   :  { %v458_v38 = vpop.permute.xlu0 %457 }
 0x147   :  { %959 = vmatmul.mubr.f32.gmra.mrb[4].mxu1 %v413_v9 }
 0x148   :  { %961 = vmatprep.mubr.f32.mxu1 %v414_v10  ;;  %v675_v29 = vpop.permute.xlu1 %674 }
 0x14b   :  { %962 = vmatmul.mubr.f32.gmra.mrb[6].mxu1 %v415_v11 }
 0x14c   :  { %964 = vmatprep.mubr.f32.mxu1 %v416_v12  ;;  %v462_v31 = vpop.permute.xlu1 %461 }
 0x14f   :  { %965 = vmatmul.mubr.f32.gmra.mrb[8].mxu1 %v417_v13 }
 0x150   :  { %967 = vmatprep.mubr.f32.mxu1 %v418_v14  ;;  %v1476_v34 = vpop.permute.xlu1 %465 }
 0x153   :  { %968 = vmatmul.mubr.f32.gmra.mrb[10].mxu1 %v419_v15 }
 0x154   :  { %970 = vmatprep.mubr.f32.mxu1 %v420_v16  ;;  %v683_v37 = vpop.permute.xlu1 %682 }
 0x157   :  { %971 = vmatmul.mubr.f32.gmra.mrb[12].mxu1 %v421_v17 }
 0x158   :  { %973 = vmatprep.mubr.f32.mxu1 %v422_v18  ;;  %v687_v40 = vpop.permute.xlu1 %686 }
 0x15b   :  { %974 = vmatmul.mubr.f32.gmra.mrb[14].mxu1 %v423_v19 }
 0x15c   :  { %v1480_v41 = vpop.permute.xlu1 %473 }
 0x160   :  { %v478_v53 = vpop.permute.xlu1 %477 }
 0x164   :  { %v695_v0 = vpop.permute.xlu1 %694 }
 0x168   :  { %v699_v17 = vpop.permute.xlu1 %698 }
 0x212   :  { %v954_v42 = vpop.f32.mrb[0].mxu1 }
 0x213   :  { %v560_v44 = vadd.f32 %v954_v42, %v430_v20  ;;  %v554_v45 = vpop.f32.mrb[1].mxu1 }
 0x214   :  { %v555_v46 = vadd.f32 %v554_v45, %v426_v33 }
 0x215   :  { %v634_v47 = vmax.f32 %v560_v44, 0.0 }
 0x216   :  { %v633_v48 = vmax.f32 %v555_v46, 0.0  ;;  %v957_v49 = vpop.f32.mrb[2].mxu1 }
 0x217   :  { %v714_v50 = vmul.f32 %v655_v30, %v634_v47  ;;  %v570_v51 = vadd.f32 %v957_v49, %v438_v43  ;;  %v564_v52 = vpop.f32.mrb[3].mxu1 }
 0x218   :  { %v713_v54 = vmul.f32 %v651_v22, %v633_v48  ;;  %v565_v55 = vadd.f32 %v564_v52, %v434_v21  ;;  %v470_v22 = vpop.permute.xlu0 %469 }
 0x219   :  { %v636_v58 = vmax.f32 %v570_v51, 0.0 }
 0x21a   :  { %v729_v57 = vadd.f32 %v714_v50, %v713_v54  ;;  %v635_v59 = vmax.f32 %v565_v55, 0.0  ;;  %v960_v60 = vpop.f32.mrb[4].mxu1 }
 0x21b   :  { %v580_v61 = vadd.f32 %v960_v60, %v446_v56  ;;  %v574_v62 = vpop.f32.mrb[5].mxu1  ;;  %v716_v1 = vmul.f32 %v663_v25, %v636_v58 }
 0x21c   :  { %v715_v35 = vmul.f32 %v659_v24, %v635_v59  ;;  %v575_v63 = vadd.f32 %v574_v62, %v442_v23  ;;  %v482_v47 = vpop.permute.xlu0 %481 }
 0x21d   :  { %v638_v3 = vmax.f32 %v580_v61, 0.0 }
 0x21e   :  { %v730_v2 = vadd.f32 %v729_v57, %v715_v35  ;;  %v637_v4 = vmax.f32 %v575_v63, 0.0  ;;  %v963_v5 = vpop.f32.mrb[6].mxu1 }
 0x21f   :  { %v590_v6 = vadd.f32 %v963_v5, %v454_v27  ;;  %v584_v7 = vpop.f32.mrb[7].mxu1  ;;  %v718_v11 = vmul.f32 %v671_v28, %v638_v3 }
 0x220   :  { %v717_v8 = vmul.f32 %v667_v32, %v637_v4  ;;  %v731_v9 = vadd.f32 %v730_v2, %v716_v1  ;;  %v585_v10 = vadd.f32 %v584_v7, %v450_v26  ;;  %v486_v26 = vpop.permute.xlu1 %485 }
 0x221   :  { %v640_v13 = vmax.f32 %v590_v6, 0.0 }
 0x222   :  { %v732_v12 = vadd.f32 %v731_v9, %v717_v8  ;;  %v639_v14 = vmax.f32 %v585_v10, 0.0  ;;  %v966_v15 = vpop.f32.mrb[8].mxu1  ;;  %v751_v8 = vstv %s1504_s4 }
 0x223   :  { %v600_v16 = vadd.f32 %v966_v15, %v462_v31  ;;  %v594_v18 = vpop.f32.mrb[9].mxu1  ;;  %v720_v23 = vmul.f32 %v679_v36, %v640_v13 }
 0x224   :  { %v719_v19 = vmul.f32 %v675_v29, %v639_v14  ;;  %v733_v20 = vadd.f32 %v732_v12, %v718_v11  ;;  %v595_v21 = vadd.f32 %v594_v18, %v458_v38  ;;  %v707_v52 = vpop.permute.xlu1 %706 }
 0x225   :  { %v642_v25 = vmax.f32 %v600_v16, 0.0 }
 0x226   :  { %v734_v24 = vadd.f32 %v733_v20, %v719_v19  ;;  %v641_v27 = vmax.f32 %v595_v21, 0.0  ;;  %v969_v30 = vpop.f32.mrb[10].mxu1 }
 0x227   :  { %v610_v32 = vadd.f32 %v969_v30, %v470_v22  ;;  %v604_v33 = vpop.f32.mrb[11].mxu1  ;;  %v722_v44 = vmul.f32 %v687_v40, %v642_v25 }
 0x228   :  { %v721_v28 = vmul.f32 %v683_v37, %v641_v27  ;;  %v735_v42 = vadd.f32 %v734_v24, %v720_v23  ;;  %v605_v43 = vadd.f32 %v604_v33, %v1476_v34  ;;  %v703_v34 = vpop.permute.xlu0 %702 }
 0x229   :  { %v644_v45 = vmax.f32 %v610_v32, 0.0 }
 0x22a   :  { %v736_v31 = vadd.f32 %v735_v42, %v721_v28  ;;  %v643_v46 = vmax.f32 %v605_v43, 0.0  ;;  %v972_v29 = vpop.f32.mrb[12].mxu1 }
 0x22b   :  { %v620_v48 = vadd.f32 %v972_v29, %v478_v53  ;;  %v614_v49 = vpop.f32.mrb[13].mxu1  ;;  %v724_v54 = vmul.f32 %v695_v0, %v644_v45 }
 0x22c   :  { %v723_v36 = vmul.f32 %v1478_v39, %v643_v46  ;;  %v737_v50 = vadd.f32 %v736_v31, %v722_v44  ;;  %v615_v51 = vadd.f32 %v614_v49, %v1480_v41  ;;  %v711_v39 = vpop.permute.xlu1 %710 }
 0x22d   :  { %v646_v37 = vmax.f32 %v620_v48, 0.0 }
 0x22e   :  { %v738_v55 = vadd.f32 %v737_v50, %v723_v36  ;;  %v645_v56 = vmax.f32 %v615_v51, 0.0  ;;  %v975_v57 = vpop.f32.mrb[14].mxu1 }
 0x22f   :  { %v630_v40 = vadd.f32 %v975_v57, %v486_v26  ;;  %v624_v58 = vpop.f32.mrb[15].mxu1  ;;  %v726_v62 = vmul.f32 %v703_v34, %v646_v37 }
 0x230   :  { %v725_v59 = vmul.f32 %v699_v17, %v645_v56  ;;  %v739_v60 = vadd.f32 %v738_v55, %v724_v54  ;;  %v625_v61 = vadd.f32 %v624_v58, %v482_v47 }
 0x231   :  { %v648_v35 = vmax.f32 %v630_v40, 0.0 }
 0x232   :  { %v740_v53 = vadd.f32 %v739_v60, %v725_v59  ;;  %v647_v63 = vmax.f32 %v625_v61, 0.0 }
 0x233   :  { %v728_v41 = vmul.f32 %v711_v39, %v648_v35 }
 0x234   :  { %v741_v1 = vadd.f32 %v740_v53, %v726_v62  ;;  %v727_v2 = vmul.f32 %v707_v52, %v647_v63 }
 0x236   :  { %v742_v3 = vadd.f32 %v741_v1, %v727_v2 }
 0x238   :  { %v743_v0 = vadd.f32 %v742_v3, %v728_v41 }
 0x23a   :  { %v744_v4 = vrot.slane %v743_v0, 4 }
 0x23c   :  { %v745_v5 = vadd.f32 %v744_v4, %v743_v0 }
 0x23e   :  { %v746_v38 = vrot.slane %v745_v5, 2 }
 0x240   :  { %v747_v6 = vadd.f32 %v746_v38, %v745_v5 }
 0x242   :  { %v748_v7 = vrot.slane %v747_v6, 1 }
 0x244   :  { %v749_v9 = vadd.f32 %v748_v7, %v747_v6 }
 0x246   :  { %v752_v10 = vadd.f32 %v751_v8, %v749_v9 }
 0x248   :  { %753 = vst [vmem:[#allocation3] sm:$0x1] %v752_v10 }
 0x249   :  { %1088 = shalt.err (!%p1085_p4)
}
 0x24a   :  { %s1089_s20 = scalar_lea.hbm %s1505_s5, 16 }
 0x24b   :  { %p1090_p5 = scmp.ne.s32.totalorder %s1505_s5, %s1089_s20  ;;  %p1093_p6 = scmp.lt.u32.totalorder %s1089_s20, %s1505_s5 }
 0x24d   :  { %p1095_p7 = pnand %p1093_p6, %p1090_p5 }
 0x24f   :  { %1098 = shalt.err (!%p1095_p7)
}
 0x250   :  { %763 = dma.vmem_to_hbm [thread:$0]  %s761_s15, 16, %s1505_s5, [#allocation4]  }
 0x251   :  { %1099 = dma.done.wait [#allocation4], 16  }
 0x252   :  { %1100 = vsyncadd [#allocation4], 4294967280 }
 0x253   :  { %767 = vsyncpa [#allocation4], 1 }

</bundles_post_ra>
